<compile_context>
chip_gen: v7x
topology: tpu7x:2x2x1
jax: 0.10.0
libtpu: 0.0.40
codegen_flags: <defaults>
</compile_context>

<pallas_src>
import jax
import jax.numpy as jnp
from jax.experimental import pallas as pl
from jax.experimental.pallas import tpu as pltpu


def _mlp_kernel(x_ref,
                w1_ref, b1_ref,
                w2_ref, b2_ref,
                w3_ref, b3_ref,
                w4_ref, b4_ref,
                o_ref):
    """Fused 4-layer MLP (3x ReLU) for one batch tile, all operands in VMEM.

    x, W* are bf16; accumulation and biases are f32; output is f32.
    """
    h = jnp.dot(x_ref[...], w1_ref[...],
                preferred_element_type=jnp.float32) + b1_ref[...]
    h = jnp.maximum(h, 0.0).astype(jnp.bfloat16)

    h = jnp.dot(h, w2_ref[...],
                preferred_element_type=jnp.float32) + b2_ref[...]
    h = jnp.maximum(h, 0.0).astype(jnp.bfloat16)

    h = jnp.dot(h, w3_ref[...],
                preferred_element_type=jnp.float32) + b3_ref[...]
    h = jnp.maximum(h, 0.0).astype(jnp.bfloat16)

    logits = jnp.dot(h, w4_ref[...],
                     preferred_element_type=jnp.float32) + b4_ref[...]
    o_ref[...] = logits.astype(o_ref.dtype)


def base_policy_net_forward(obs, params, state=None, *, batch_tile=256):
    """Pallas forward pass. Returns (logits, state) like the PyTorch module.

    batch_tile: rows per grid step. 256 fills the 256-wide MXUs on v6e/v7x
    (and is 2 full passes on v5e's 128-wide MXU). Keep it <= ~512-1024 so the
    fused activation chain stays comfortably in VMEM.
    """
    batch = obs.shape[0]
    x = obs.reshape(batch, -1).astype(jnp.bfloat16)   # obs.view(batch, -1)
    in_dim = x.shape[1]

    (w1, b1), (w2, b2), (w3, b3), (w4, b4) = params
    hid = w1.shape[1]
    out_dim = w4.shape[1]

    # --- lane-dense output: pad the last layer's N to a multiple of 128 ---
    out_pad = ((out_dim + 127) // 128) * 128
    if out_pad != out_dim:
        w4 = jnp.zeros((hid, out_pad), w4.dtype).at[:, :out_dim].set(w4)
        b4 = jnp.zeros((1, out_pad), b4.dtype).at[:, :out_dim].set(b4)

    # --- pad the batch inside the wrapper (zeros), slice the output back ---
    padded_batch = ((batch + batch_tile - 1) // batch_tile) * batch_tile
    if padded_batch != batch:
        x = jnp.zeros((padded_batch, in_dim), x.dtype).at[:batch, :].set(x)

    # bf16 weights for native MXU rate; f32 biases added to the f32 accumulator.
    w1b, w2b, w3b, w4b = (w.astype(jnp.bfloat16) for w in (w1, w2, w3, w4))
    b1f, b2f, b3f, b4f = (b.astype(jnp.float32) for b in (b1, b2, b3, b4))

    grid = (padded_batch // batch_tile,)

    # Batch is tiled over the grid; weights/biases use a constant block index,
    # so they stay resident in VMEM across grid steps.
    x_spec = pl.BlockSpec((batch_tile, in_dim), lambda i: (i, 0))
    o_spec = pl.BlockSpec((batch_tile, out_pad), lambda i: (i, 0))

    def rep(shape):
        return pl.BlockSpec(shape, lambda i: (0, 0))

    logits = pl.pallas_call(
        _mlp_kernel,
        out_shape=jax.ShapeDtypeStruct((padded_batch, out_pad), jnp.float32),
        grid_spec=pltpu.PrefetchScalarGridSpec(
            num_scalar_prefetch=0,
            grid=grid,
            in_specs=[
                x_spec,
                rep((in_dim, hid)),   rep((1, hid)),
                rep((hid, hid)),      rep((1, hid)),
                rep((hid, hid)),      rep((1, hid)),
                rep((hid, out_pad)),  rep((1, out_pad)),
            ],
            out_specs=o_spec,
        ),
        compiler_params=pltpu.CompilerParams(
            dimension_semantics=("parallel",)),
    )(x, w1b, b1f, w2b, b2f, w3b, b3f, w4b, b4f)

    return logits[:batch, :out_dim], state


def init_params(key, in_dim, hid, out_dim):
    """Deterministic init mimicking torch.nn.Linear default U[-1/sqrt(fan_in), +1/sqrt(fan_in)]."""
    dims = [(in_dim, hid), (hid, hid), (hid, hid), (hid, out_dim)]
    params = []
    for (fi, fo) in dims:
        key, kw, kb = jax.random.split(key, 3)
        bound = 1.0 / jnp.sqrt(jnp.float32(fi))
        w = jax.random.uniform(kw, (fi, fo), jnp.float32, -bound, bound)
        b = jax.random.uniform(kb, (1, fo), jnp.float32, -bound, bound)
        params.append((w, b))
    return params


if __name__ == "__main__":
    # Small shapes consistent with the module:
    #   state_shape = (4, 4)  -> in_dim = 16 after flatten
    #   action_shape = 8      -> out_dim = 8
    #   batch = 8  (wrapper pads to batch_tile internally)
    batch = 8
    state_shape = (4, 4)
    action_dim = 8
    hid = 128
    in_dim = int(state_shape[0] * state_shape[1])

    key = jax.random.PRNGKey(0)
    key, k_obs = jax.random.split(key)
    obs = jax.random.normal(k_obs, (batch,) + state_shape, dtype=jnp.float32)

    params = init_params(key, in_dim, hid, action_dim)

    logits, state = base_policy_net_forward(obs, params, state=None)
    logits = jax.block_until_ready(logits)

    assert logits.shape == (batch, action_dim)
    assert state is None

    # Reference 1: exact bf16-compute / f32-accumulate path (matches kernel).
    x = obs.reshape(batch, -1).astype(jnp.float32)
    ref = x
    for i, (w, b) in enumerate(params):
        ref = jnp.dot(ref.astype(jnp.bfloat16), w.astype(jnp.bfloat16),
                      preferred_element_type=jnp.float32) + b
        if i < 3:
            ref = jnp.maximum(ref, 0.0)
    assert jnp.allclose(logits, ref, atol=1e-3, rtol=1e-3), \
        "mismatch vs bf16-path reference"

    # Reference 2: pure-f32 torch-equivalent semantics (loose tolerance for bf16).
    ref32 = x
    for i, (w, b) in enumerate(params):
        ref32 = ref32 @ w + b
        if i < 3:
            ref32 = jnp.maximum(ref32, 0.0)
    assert jnp.allclose(logits, ref32, atol=5e-2, rtol=5e-2), \
        "mismatch vs f32 reference"

    print("KERNEL_OK")
</pallas_src>

<mosaic_0001>
module attributes {stable_mosaic.version = 11 : i64} {
  func.func @_mlp_kernel(%arg0: i32, %arg1: memref<256x16xbf16, #tpu.memory_space<vmem>>, %arg2: memref<16x128xbf16, #tpu.memory_space<vmem>>, %arg3: memref<1x128xf32, #tpu.memory_space<vmem>>, %arg4: memref<128x128xbf16, #tpu.memory_space<vmem>>, %arg5: memref<1x128xf32, #tpu.memory_space<vmem>>, %arg6: memref<128x128xbf16, #tpu.memory_space<vmem>>, %arg7: memref<1x128xf32, #tpu.memory_space<vmem>>, %arg8: memref<128x128xbf16, #tpu.memory_space<vmem>>, %arg9: memref<1x128xf32, #tpu.memory_space<vmem>>, %arg10: memref<256x128xf32, #tpu.memory_space<vmem>>) attributes {dimension_semantics = [#tpu.dimension_semantics<parallel>], iteration_bounds = array<i64: 1>, scalar_prefetch = 0 : i64, scratch_operands = 0 : i64, tpu.core_type = #tpu.core_type<tc>, window_params = [{transform_indices = @transform_0, window_bounds = array<i64: 256, 16>}, {pipeline_mode = #tpu.pipeline_mode<synchronous>, transform_indices = @transform_1, window_bounds = array<i64: 16, 128>}, {pipeline_mode = #tpu.pipeline_mode<synchronous>, transform_indices = @transform_2, window_bounds = array<i64: 1, 128>}, {pipeline_mode = #tpu.pipeline_mode<synchronous>, transform_indices = @transform_3, window_bounds = array<i64: 128, 128>}, {pipeline_mode = #tpu.pipeline_mode<synchronous>, transform_indices = @transform_4, window_bounds = array<i64: 1, 128>}, {pipeline_mode = #tpu.pipeline_mode<synchronous>, transform_indices = @transform_5, window_bounds = array<i64: 128, 128>}, {pipeline_mode = #tpu.pipeline_mode<synchronous>, transform_indices = @transform_6, window_bounds = array<i64: 1, 128>}, {pipeline_mode = #tpu.pipeline_mode<synchronous>, transform_indices = @transform_7, window_bounds = array<i64: 128, 128>}, {pipeline_mode = #tpu.pipeline_mode<synchronous>, transform_indices = @transform_8, window_bounds = array<i64: 1, 128>}, {transform_indices = @transform_9, window_bounds = array<i64: 256, 128>}]} {
    %c0 = arith.constant 0 : index
    %c0_0 = arith.constant 0 : index
    %0 = vector.load %arg1[%c0, %c0_0] : memref<256x16xbf16, #tpu.memory_space<vmem>>, vector<256x16xbf16>
    %c0_1 = arith.constant 0 : index
    %c0_2 = arith.constant 0 : index
    %1 = vector.load %arg2[%c0_1, %c0_2] : memref<16x128xbf16, #tpu.memory_space<vmem>>, vector<16x128xbf16>
    %cst = arith.constant dense<0.000000e+00> : vector<256x128xf32>
    %2 = tpu.matmul %0, %1, %cst {dimension_numbers = #tpu.dot_dimension_numbers<[1], [0], [0], [1], [0, 0, 1, 1], [], []>} : vector<256x16xbf16>, vector<16x128xbf16>, vector<256x128xf32> -> vector<256x128xf32>
    %c0_3 = arith.constant 0 : index
    %c0_4 = arith.constant 0 : index
    %3 = vector.load %arg3[%c0_3, %c0_4] : memref<1x128xf32, #tpu.memory_space<vmem>>, vector<1x128xf32>
    %4 = vector.broadcast %3 : vector<1x128xf32> to vector<256x128xf32>
    %5 = arith.addf %2, %4 : vector<256x128xf32>
    %cst_5 = arith.constant 0.000000e+00 : f32
    %6 = vector.broadcast %cst_5 : f32 to vector<256x128xf32>
    %7 = arith.maximumf %5, %6 : vector<256x128xf32>
    %8 = arith.truncf %7 : vector<256x128xf32> to vector<256x128xbf16>
    %c0_6 = arith.constant 0 : index
    %c0_7 = arith.constant 0 : index
    %9 = vector.load %arg4[%c0_6, %c0_7] : memref<128x128xbf16, #tpu.memory_space<vmem>>, vector<128x128xbf16>
    %cst_8 = arith.constant dense<0.000000e+00> : vector<256x128xf32>
    %10 = tpu.matmul %8, %9, %cst_8 {dimension_numbers = #tpu.dot_dimension_numbers<[1], [0], [0], [1], [0, 0, 1, 1], [], []>} : vector<256x128xbf16>, vector<128x128xbf16>, vector<256x128xf32> -> vector<256x128xf32>
    %c0_9 = arith.constant 0 : index
    %c0_10 = arith.constant 0 : index
    %11 = vector.load %arg5[%c0_9, %c0_10] : memref<1x128xf32, #tpu.memory_space<vmem>>, vector<1x128xf32>
    %12 = vector.broadcast %11 : vector<1x128xf32> to vector<256x128xf32>
    %13 = arith.addf %10, %12 : vector<256x128xf32>
    %cst_11 = arith.constant 0.000000e+00 : f32
    %14 = vector.broadcast %cst_11 : f32 to vector<256x128xf32>
    %15 = arith.maximumf %13, %14 : vector<256x128xf32>
    %16 = arith.truncf %15 : vector<256x128xf32> to vector<256x128xbf16>
    %c0_12 = arith.constant 0 : index
    %c0_13 = arith.constant 0 : index
    %17 = vector.load %arg6[%c0_12, %c0_13] : memref<128x128xbf16, #tpu.memory_space<vmem>>, vector<128x128xbf16>
    %cst_14 = arith.constant dense<0.000000e+00> : vector<256x128xf32>
    %18 = tpu.matmul %16, %17, %cst_14 {dimension_numbers = #tpu.dot_dimension_numbers<[1], [0], [0], [1], [0, 0, 1, 1], [], []>} : vector<256x128xbf16>, vector<128x128xbf16>, vector<256x128xf32> -> vector<256x128xf32>
    %c0_15 = arith.constant 0 : index
    %c0_16 = arith.constant 0 : index
    %19 = vector.load %arg7[%c0_15, %c0_16] : memref<1x128xf32, #tpu.memory_space<vmem>>, vector<1x128xf32>
    %20 = vector.broadcast %19 : vector<1x128xf32> to vector<256x128xf32>
    %21 = arith.addf %18, %20 : vector<256x128xf32>
    %cst_17 = arith.constant 0.000000e+00 : f32
    %22 = vector.broadcast %cst_17 : f32 to vector<256x128xf32>
    %23 = arith.maximumf %21, %22 : vector<256x128xf32>
    %24 = arith.truncf %23 : vector<256x128xf32> to vector<256x128xbf16>
    %c0_18 = arith.constant 0 : index
    %c0_19 = arith.constant 0 : index
    %25 = vector.load %arg8[%c0_18, %c0_19] : memref<128x128xbf16, #tpu.memory_space<vmem>>, vector<128x128xbf16>
    %cst_20 = arith.constant dense<0.000000e+00> : vector<256x128xf32>
    %26 = tpu.matmul %24, %25, %cst_20 {dimension_numbers = #tpu.dot_dimension_numbers<[1], [0], [0], [1], [0, 0, 1, 1], [], []>} : vector<256x128xbf16>, vector<128x128xbf16>, vector<256x128xf32> -> vector<256x128xf32>
    %c0_21 = arith.constant 0 : index
    %c0_22 = arith.constant 0 : index
    %27 = vector.load %arg9[%c0_21, %c0_22] : memref<1x128xf32, #tpu.memory_space<vmem>>, vector<1x128xf32>
    %28 = vector.broadcast %27 : vector<1x128xf32> to vector<256x128xf32>
    %29 = arith.addf %26, %28 : vector<256x128xf32>
    %c0_23 = arith.constant 0 : index
    %c0_24 = arith.constant 0 : index
    %30 = vector.load %arg10[%c0_23, %c0_24] : memref<256x128xf32, #tpu.memory_space<vmem>>, vector<256x128xf32>
    tpu.vector_store %arg10[%c0_23, %c0_24], %29 {strides = array<i32>} : memref<256x128xf32, #tpu.memory_space<vmem>>, vector<256x128xf32>,
    return
  }
  func.func @transform_0(%arg0: i32) -> (i32, i32) {
    %c0_i32 = arith.constant 0 : i32
    %c0_i32_0 = arith.constant 0 : i32
    return %arg0, %c0_i32 : i32, i32
  }
  func.func @transform_1(%arg0: i32) -> (i32, i32) {
    %c0_i32 = arith.constant 0 : i32
    %c0_i32_0 = arith.constant 0 : i32
    %c0_i32_1 = arith.constant 0 : i32
    return %c0_i32, %c0_i32_0 : i32, i32
  }
  func.func @transform_2(%arg0: i32) -> (i32, i32) {
    %c0_i32 = arith.constant 0 : i32
    %c0_i32_0 = arith.constant 0 : i32
    %c0_i32_1 = arith.constant 0 : i32
    return %c0_i32, %c0_i32_0 : i32, i32
  }
  func.func @transform_3(%arg0: i32) -> (i32, i32) {
    %c0_i32 = arith.constant 0 : i32
    %c0_i32_0 = arith.constant 0 : i32
    %c0_i32_1 = arith.constant 0 : i32
    return %c0_i32, %c0_i32_0 : i32, i32
  }
  func.func @transform_4(%arg0: i32) -> (i32, i32) {
    %c0_i32 = arith.constant 0 : i32
    %c0_i32_0 = arith.constant 0 : i32
    %c0_i32_1 = arith.constant 0 : i32
    return %c0_i32, %c0_i32_0 : i32, i32
  }
  func.func @transform_5(%arg0: i32) -> (i32, i32) {
    %c0_i32 = arith.constant 0 : i32
    %c0_i32_0 = arith.constant 0 : i32
    %c0_i32_1 = arith.constant 0 : i32
    return %c0_i32, %c0_i32_0 : i32, i32
  }
  func.func @transform_6(%arg0: i32) -> (i32, i32) {
    %c0_i32 = arith.constant 0 : i32
    %c0_i32_0 = arith.constant 0 : i32
    %c0_i32_1 = arith.constant 0 : i32
    return %c0_i32, %c0_i32_0 : i32, i32
  }
  func.func @transform_7(%arg0: i32) -> (i32, i32) {
    %c0_i32 = arith.constant 0 : i32
    %c0_i32_0 = arith.constant 0 : i32
    %c0_i32_1 = arith.constant 0 : i32
    return %c0_i32, %c0_i32_0 : i32, i32
  }
  func.func @transform_8(%arg0: i32) -> (i32, i32) {
    %c0_i32 = arith.constant 0 : i32
    %c0_i32_0 = arith.constant 0 : i32
    %c0_i32_1 = arith.constant 0 : i32
    return %c0_i32, %c0_i32_0 : i32, i32
  }
  func.func @transform_9(%arg0: i32) -> (i32, i32) {
    %c0_i32 = arith.constant 0 : i32
    %c0_i32_0 = arith.constant 0 : i32
    return %arg0, %c0_i32 : i32, i32
  }
}

</mosaic_0001>

<bundles_post_ra>
// kernel: tpu_custom_call.1
= control target key start
LH: loop header
LB: loop body
LE: loop exit
PB: predicated region body
PF: predicated region fallthrough
CT: control target
= control target key end

     0   :  { %14 = vsyncpa [#allocation3], 0  ;;  %s2074_s0 = inlined_call_operand.vmem [shape: bf16[256,16], index: 0, kind: input, shape index: {}]   ;;  %s2075_s1 = inlined_call_operand.vmem [shape: bf16[16,128], index: 1, kind: input, shape index: {}]   ;;  %s2076_s2 = inlined_call_operand.vmem [shape: f32[1,128], index: 2, kind: input, shape index: {}]   ;;  %s2077_s3 = inlined_call_operand.vmem [shape: bf16[128,128], index: 3, kind: input, shape index: {}]   ;;  %s2078_s4 = inlined_call_operand.vmem [shape: f32[1,128], index: 4, kind: input, shape index: {}]   ;;  %s2079_s5 = inlined_call_operand.vmem [shape: bf16[128,128], index: 5, kind: input, shape index: {}]   ;;  %s2080_s6 = inlined_call_operand.vmem [shape: f32[1,128], index: 6, kind: input, shape index: {}]   ;;  %s2081_s7 = inlined_call_operand.hbm [shape: bf16[128,128], index: 7, kind: input, shape index: {}]   ;;  %s2082_s8 = inlined_call_operand.vmem [shape: f32[1,128], index: 8, kind: input, shape index: {}]   ;;  %s2083_s9 = inlined_call_operand.hbm [shape: f32[256,128], index: 9, kind: output, shape index: {}]  }
   0x1   :  { %15 = vsyncpa [#allocation4], 0  ;;  %s1713_s30 = smov [#allocation2]   ;;  %s1665_s13 = scalar_lea.hbm %s2081_s7, 1024 }
   0x2   :  { %s35_s10 = sshll.u32 %s1713_s30, 4  ;;  %p1666_p0 = scmp.ne.s32.totalorder %s2081_s7, %s1665_s13  ;;  %s36_s10 = int_to_ptr.vmem [resolvable:$true] %s35_s10 }
   0x3   :  { %p1669_p1 = scmp.lt.u32.totalorder %s1665_s13, %s2081_s7 }
   0x5   :  { %p1671_p2 = pnand %p1669_p1, %p1666_p0 }
   0x7   :  { %1674 = shalt.err (!%p1671_p2)
}
   0x8   :  { %s1675_s18 = scalar_lea.vmem %s36_s10, 1024  ;;  %p1680_p4 = scmp.lt.s32.totalorder %s36_s10, %s36_s10 }
   0x9   :  { %p1676_p3 = scmp.ne.s32.totalorder %s36_s10, %s1675_s18  ;;  %p1681_p5 = scmp.lt.s32.totalorder %s1675_s18, %s1675_s18 }
   0xb   :  { %p1682_p6 = por %p1681_p5, %p1680_p4 }
   0xd   :  { %p1683_p7 = pnand %p1682_p6, %p1676_p3 }
   0xf   :  { %1686 = shalt.err (!%p1683_p7)
}
  0x10   :  { %s1714_s19 = smov 64   ;;  %s1715_s20 = smov 4  }
  0x11   :  { %41 = dma.hbm_to_vmem [thread:$0]  %s2081_s7, 1024, %s36_s10, [#allocation3], %s1714_s19, %s1714_s19, %s1715_s20  }
  0x12   :  { %1709 = dma.done.wait [#allocation3], 1024  }
  0x13   :  { %1710 = vsyncadd [#allocation3], 4294966272  ;;  %v1624_v0 = vld [vmem:[%s2075_s1] sm:$0xff]   ;;  %vm175_vm0 = vcmask 130048   ;;  %v1626_v2 = vld [vmem:[%s2074_s0 + $0x8] sm:$0xff]  }
  0x14   :  { %v1625_v1 = vld [vmem:[%s2074_s0] sm:$0xff]   ;;  %1424 = vmatprep.subr.bf16.mxu0 %v1624_v0  ;;  %v1627_v3 = vld [vmem:[%s2074_s0 + $0x10] sm:$0xff]   ;;  %v1628_v4 = vld [vmem:[%s2074_s0 + $0x18] sm:$0xff]  }
  0x15   :  { %1425 = vmatpush3.bf16.msra.mxu0 %v1624_v0  ;;  %1426 = vmatprep.mubr.msk.bf16.mxu0 %vm175_vm0, %v1625_v1  ;;  %v1629_v5 = vld [vmem:[%s2074_s0 + $0x20] sm:$0xff]   ;;  %v1630_v6 = vld [vmem:[%s2074_s0 + $0x28] sm:$0xff]   ;;  %v1631_v9 = vld [vmem:[%s2074_s0 + $0x30] sm:$0xff]  }
  0x16   :  { %v1641_v7 = vld [vmem:[%s2077_s3] sm:$0xff]   ;;  %v1642_v8 = vld [vmem:[%s2077_s3 + $0x8] sm:$0xff]   ;;  %v1643_v10 = vld [vmem:[%s2077_s3 + $0x10] sm:$0xff]  }
  0x17   :  { %1458 = vmatprep.subr.bf16.mxu1 %v1641_v7  ;;  %v1644_v11 = vld [vmem:[%s2077_s3 + $0x18] sm:$0xff]   ;;  %v1633_v13 = vld [vmem:[%s2074_s0 + $0x40] sm:$0xff]   ;;  %v1646_v15 = vld [vmem:[%s2077_s3 + $0x28] sm:$0xff]  }
  0x18   :  { %1427 = vmatmul.mubr.msk.bf16.vlgmr.msra.gmra.mrb[0].mxu0 %vm175_vm0, %v1626_v2  ;;  %1459 = vmatpush3.bf16.msra.mxu1 %v1641_v7  ;;  %v1632_v12 = vld [vmem:[%s2074_s0 + $0x38] sm:$0xff]   ;;  %v1645_v14 = vld [vmem:[%s2077_s3 + $0x20] sm:$0xff]   ;;  %v1634_v16 = vld [vmem:[%s2074_s0 + $0x48] sm:$0xff]  }
  0x19   :  { %1430 = vmatprep.mubr.msk.bf16.mxu0 %vm175_vm0, %v1627_v3  ;;  %1460 = vmatprep.subr.bf16.mxu1 %v1642_v8  ;;  %v1635_v17 = vld [vmem:[%s2074_s0 + $0x50] sm:$0xff]   ;;  %v1636_v18 = vld [vmem:[%s2074_s0 + $0x58] sm:$0xff]   ;;  %v1637_v19 = vld [vmem:[%s2074_s0 + $0x60] sm:$0xff]  }
  0x1a   :  { %v1638_v20 = vld [vmem:[%s2074_s0 + $0x68] sm:$0xff]   ;;  %v1639_v21 = vld [vmem:[%s2074_s0 + $0x70] sm:$0xff]   ;;  %v1640_v22 = vld [vmem:[%s2074_s0 + $0x78] sm:$0xff]  }
  0x1b   :  { %v1647_v23 = vld [vmem:[%s2077_s3 + $0x30] sm:$0xff]   ;;  %v1648_v24 = vld [vmem:[%s2077_s3 + $0x38] sm:$0xff]   ;;  %v1649_v25 = vld [vmem:[%s2079_s5] sm:$0xff]  }
  0x1c   :  { %1461 = vmatpush3.bf16.msra.mxu1 %v1642_v8  ;;  %v1650_v26 = vld [vmem:[%s2079_s5 + $0x8] sm:$0xff]   ;;  %1506 = vmatprep.subr.bf16.mxu0 %v1649_v25  ;;  %v1651_v27 = vld [vmem:[%s2079_s5 + $0x10] sm:$0xff]   ;;  %v1652_v28 = vld [vmem:[%s2079_s5 + $0x18] sm:$0xff]  }
  0x1d   :  { %1462 = vmatprep.subr.bf16.mxu1 %v1643_v10  ;;  %1507 = vmatpush3.bf16.msra.mxu0 %v1649_v25  ;;  %v1653_v29 = vld [vmem:[%s2079_s5 + $0x20] sm:$0xff]   ;;  %v1654_v30 = vld [vmem:[%s2079_s5 + $0x28] sm:$0xff]   ;;  %v1655_v31 = vld [vmem:[%s2079_s5 + $0x30] sm:$0xff]  }
  0x1e   :  { %1508 = vmatprep.subr.bf16.mxu0 %v1650_v26  ;;  %v1896_v32 = vld [vmem:[%s2076_s2] ss:$0 sm:$0xff] }
  0x20   :  { %1431 = vmatmul.mubr.msk.bf16.gmra.mrb[4].mxu0 %vm175_vm0, %v1628_v4  ;;  %1463 = vmatpush3.bf16.msra.mxu1 %v1643_v10 }
  0x21   :  { %1434 = vmatprep.mubr.msk.bf16.mxu0 %vm175_vm0, %v1629_v5  ;;  %1464 = vmatprep.subr.bf16.mxu1 %v1644_v11 }
  0x22   :  { %1509 = vmatpush3.bf16.msra.mxu0 %v1650_v26 }
  0x23   :  { %1510 = vmatprep.subr.bf16.mxu0 %v1651_v27 }
  0x24   :  { %1465 = vmatpush3.bf16.msra.mxu1 %v1644_v11 }
  0x25   :  { %1466 = vmatprep.subr.bf16.mxu1 %v1645_v14 }
  0x26   :  { %1511 = vmatpush3.bf16.msra.mxu0 %v1651_v27 }
  0x27   :  { %1512 = vmatprep.subr.bf16.mxu0 %v1652_v28 }
  0x28   :  { %1435 = vmatmul.mubr.msk.bf16.gmra.mrb[8].mxu0 %vm175_vm0, %v1630_v6  ;;  %1467 = vmatpush3.bf16.msra.mxu1 %v1645_v14 }
  0x29   :  { %1438 = vmatprep.mubr.msk.bf16.mxu0 %vm175_vm0, %v1631_v9  ;;  %1468 = vmatprep.subr.bf16.mxu1 %v1646_v15 }
  0x2a   :  { %1513 = vmatpush3.bf16.msra.mxu0 %v1652_v28 }
  0x2b   :  { %1514 = vmatprep.subr.bf16.mxu0 %v1653_v29 }
  0x2c   :  { %1469 = vmatpush3.bf16.msra.mxu1 %v1646_v15 }
  0x2d   :  { %1470 = vmatprep.subr.bf16.mxu1 %v1647_v23 }
  0x2e   :  { %1515 = vmatpush3.bf16.msra.mxu0 %v1653_v29 }
  0x2f   :  { %1516 = vmatprep.subr.bf16.mxu0 %v1654_v30 }
  0x30   :  { %1439 = vmatmul.mubr.msk.bf16.gmra.mrb[12].mxu0 %vm175_vm0, %v1632_v12  ;;  %1471 = vmatpush3.bf16.msra.mxu1 %v1647_v23 }
  0x31   :  { %1442 = vmatprep.mubr.msk.bf16.mxu0 %vm175_vm0, %v1633_v13  ;;  %1472 = vmatprep.subr.bf16.mxu1 %v1648_v24 }
  0x32   :  { %1517 = vmatpush3.bf16.msra.mxu0 %v1654_v30 }
  0x33   :  { %1518 = vmatprep.subr.bf16.mxu0 %v1655_v31 }
  0x34   :  { %1473 = vmatpush3.bf16.msra.mxu1 %v1648_v24 }
  0x36   :  { %1519 = vmatpush3.bf16.msra.mxu0 %v1655_v31 }
  0x38   :  { %1443 = vmatmul.mubr.msk.bf16.gmra.mrb[16].mxu0 %vm175_vm0, %v1634_v16 }
  0x39   :  { %1446 = vmatprep.mubr.msk.bf16.mxu0 %vm175_vm0, %v1635_v17 }
  0x40   :  { %1447 = vmatmul.mubr.msk.bf16.gmra.mrb[20].mxu0 %vm175_vm0, %v1636_v18 }
  0x41   :  { %1450 = vmatprep.mubr.msk.bf16.mxu0 %vm175_vm0, %v1637_v19 }
  0x48   :  { %1451 = vmatmul.mubr.msk.bf16.gmra.mrb[24].mxu0 %vm175_vm0, %v1638_v20 }
  0x49   :  { %1454 = vmatprep.mubr.msk.bf16.mxu0 %vm175_vm0, %v1639_v21 }
  0x50   :  { %1455 = vmatmul.mubr.msk.bf16.gmra.mrb[28].mxu0 %vm175_vm0, %v1640_v22 }
  0xeb   :  { %v1428_v33 = vpop.f32.mrb[0].mxu0 }
  0xec   :  { %v267_v34 = vadd.f32 %v1428_v33, %v1896_v32  ;;  %v258_v35 = vpop.f32.mrb[1].mxu0 }
  0xed   :  { %v259_v36 = vadd.f32 %v1896_v32, %v258_v35  ;;  %v1429_v37 = vpop.f32.mrb[2].mxu0 }
  0xee   :  { %v270_v38 = vadd.f32 %v1429_v37, %v1896_v32  ;;  %v261_v39 = vpop.f32.mrb[3].mxu0  ;;  %v387_v41 = vmax.f32 %v267_v34, 0.0 }
  0xef   :  { %v262_v40 = vadd.f32 %v1896_v32, %v261_v39  ;;  %v385_v43 = vmax.f32 %v259_v36, 0.0 }
  0xf0   :  { %v388_v42 = vmax.f32 %v270_v38, 0.0 }
  0xf1   :  { %v386_v44 = vmax.f32 %v262_v40, 0.0 }
  0xf2   :  { %v418_v45 = vpack.c.bf16 %v388_v42, %v387_v41 }
  0xf3   :  { %v1432_v46 = vpop.f32.mrb[4].mxu0  ;;  %v417_v47 = vpack.c.bf16 %v386_v44, %v385_v43 }
  0xf4   :  { %v283_v48 = vadd.f32 %v1432_v46, %v1896_v32  ;;  %v274_v49 = vpop.f32.mrb[5].mxu0 }
  0xf5   :  { %v275_v50 = vadd.f32 %v1896_v32, %v274_v49  ;;  %v1433_v51 = vpop.f32.mrb[6].mxu0  ;;  %1474 = vmatprep.mubr.bf16.mxu1 %v417_v47 }
  0xf6   :  { %v286_v52 = vadd.f32 %v1433_v51, %v1896_v32  ;;  %v277_v53 = vpop.f32.mrb[7].mxu0  ;;  %1475 = vmatmul.mubr.bf16.vlgmr.msra.gmra.mrb[0].mxu1 %v418_v45  ;;  %v391_v55 = vmax.f32 %v283_v48, 0.0 }
  0xf7   :  { %v278_v54 = vadd.f32 %v1896_v32, %v277_v53  ;;  %v389_v57 = vmax.f32 %v275_v50, 0.0 }
  0xf8   :  { %v392_v56 = vmax.f32 %v286_v52, 0.0 }
  0xf9   :  { %v390_v58 = vmax.f32 %v278_v54, 0.0 }
  0xfa   :  { %v420_v59 = vpack.c.bf16 %v392_v56, %v391_v55 }
  0xfb   :  { %v419_v60 = vpack.c.bf16 %v390_v58, %v389_v57  ;;  %v1436_v61 = vpop.f32.mrb[8].mxu0 }
  0xfc   :  { %v299_v62 = vadd.f32 %v1436_v61, %v1896_v32  ;;  %v290_v63 = vpop.f32.mrb[9].mxu0 }
  0xfd   :  { %v291_v0 = vadd.f32 %v1896_v32, %v290_v63  ;;  %v1437_v1 = vpop.f32.mrb[10].mxu0  ;;  %1478 = vmatprep.mubr.bf16.mxu1 %v419_v60 }
  0xfe   :  { %v302_v2 = vadd.f32 %v1437_v1, %v1896_v32  ;;  %v293_v3 = vpop.f32.mrb[11].mxu0  ;;  %1479 = vmatmul.mubr.bf16.gmra.mrb[4].mxu1 %v420_v59  ;;  %v395_v5 = vmax.f32 %v299_v62, 0.0 }
  0xff   :  { %v294_v4 = vadd.f32 %v1896_v32, %v293_v3  ;;  %v393_v7 = vmax.f32 %v291_v0, 0.0 }
 0x100   :  { %v396_v6 = vmax.f32 %v302_v2, 0.0 }
 0x101   :  { %v394_v8 = vmax.f32 %v294_v4, 0.0 }
 0x102   :  { %v422_v9 = vpack.c.bf16 %v396_v6, %v395_v5 }
 0x103   :  { %v421_v10 = vpack.c.bf16 %v394_v8, %v393_v7  ;;  %v1440_v11 = vpop.f32.mrb[12].mxu0 }
 0x104   :  { %v315_v12 = vadd.f32 %v1440_v11, %v1896_v32  ;;  %v306_v13 = vpop.f32.mrb[13].mxu0 }
 0x105   :  { %v307_v14 = vadd.f32 %v1896_v32, %v306_v13  ;;  %v1441_v15 = vpop.f32.mrb[14].mxu0  ;;  %1482 = vmatprep.mubr.bf16.mxu1 %v421_v10 }
 0x106   :  { %v318_v16 = vadd.f32 %v1441_v15, %v1896_v32  ;;  %v309_v17 = vpop.f32.mrb[15].mxu0  ;;  %1483 = vmatmul.mubr.bf16.gmra.mrb[8].mxu1 %v422_v9  ;;  %v399_v19 = vmax.f32 %v315_v12, 0.0 }
 0x107   :  { %v310_v18 = vadd.f32 %v1896_v32, %v309_v17  ;;  %v397_v21 = vmax.f32 %v307_v14, 0.0 }
 0x108   :  { %v400_v20 = vmax.f32 %v318_v16, 0.0 }
 0x109   :  { %v398_v22 = vmax.f32 %v310_v18, 0.0  ;;  %v1656_v18 = vld [vmem:[%s2079_s5 + $0x38] sm:$0xff]  }
 0x10a   :  { %v424_v23 = vpack.c.bf16 %v400_v20, %v399_v19  ;;  %1520 = vmatprep.subr.bf16.mxu0 %v1656_v18  ;;  %v1657_v19 = vld [vmem:[#allocation2] sm:$0xff]   ;;  %v1658_v20 = vld [vmem:[#allocation2 + $0x8] sm:$0xff]  }
 0x10b   :  { %v423_v24 = vpack.c.bf16 %v398_v22, %v397_v21  ;;  %v1444_v25 = vpop.f32.mrb[16].mxu0  ;;  %1521 = vmatpush3.bf16.msra.mxu0 %v1656_v18  ;;  %1602 = vmatprep.subr.bf16.mxu1 %v1657_v19  ;;  %v1933_v21 = vld [vmem:[#allocation2 + $0x18] sm:$0xff]   ;;  %v1936_v22 = vld [vmem:[#allocation2 + $0x20] sm:$0xff]  }
 0x10c   :  { %v331_v26 = vadd.f32 %v1444_v25, %v1896_v32  ;;  %v322_v27 = vpop.f32.mrb[17].mxu0  ;;  %1554 = vmatprep.subr.bf16.mxu0 %v1657_v19  ;;  %1610 = vmatpush3.bf16.msra.mxu1 %v1657_v19 }
 0x10d   :  { %v323_v28 = vadd.f32 %v1896_v32, %v322_v27  ;;  %v1445_v29 = vpop.f32.mrb[18].mxu0  ;;  %1486 = vmatprep.mubr.bf16.mxu1 %v423_v24  ;;  %1603 = vmatprep.subr.bf16.mxu1 %v1658_v20  ;;  %v1948_v24 = vld [vmem:[%s2078_s4] ss:$0 sm:$0xff] }
 0x10e   :  { %v334_v30 = vadd.f32 %v1445_v29, %v1896_v32  ;;  %v325_v31 = vpop.f32.mrb[19].mxu0  ;;  %1487 = vmatmul.mubr.bf16.gmra.mrb[12].mxu1 %v424_v23  ;;  %v403_v34 = vmax.f32 %v331_v26, 0.0  ;;  %v1940_v23 = vld [vmem:[#allocation2 + $0x28] sm:$0xff]  }
 0x10f   :  { %v326_v33 = vadd.f32 %v1896_v32, %v325_v31  ;;  %v401_v36 = vmax.f32 %v323_v28, 0.0 }
 0x110   :  { %v404_v35 = vmax.f32 %v334_v30, 0.0  ;;  %1611 = vmatpush3.bf16.msra.mxu1 %v1658_v20 }
 0x111   :  { %v402_v37 = vmax.f32 %v326_v33, 0.0 }
 0x112   :  { %v426_v38 = vpack.c.bf16 %v404_v35, %v403_v34 }
 0x113   :  { %v425_v39 = vpack.c.bf16 %v402_v37, %v401_v36  ;;  %v1448_v40 = vpop.f32.mrb[20].mxu0 }
 0x114   :  { %v347_v41 = vadd.f32 %v1448_v40, %v1896_v32  ;;  %v338_v42 = vpop.f32.mrb[21].mxu0 }
 0x115   :  { %v339_v43 = vadd.f32 %v1896_v32, %v338_v42  ;;  %v1449_v44 = vpop.f32.mrb[22].mxu0  ;;  %1490 = vmatprep.mubr.bf16.mxu1 %v425_v39 }
 0x116   :  { %v350_v45 = vadd.f32 %v1449_v44, %v1896_v32  ;;  %v341_v46 = vpop.f32.mrb[23].mxu0  ;;  %1491 = vmatmul.mubr.bf16.gmra.mrb[16].mxu1 %v426_v38  ;;  %v407_v48 = vmax.f32 %v347_v41, 0.0 }
 0x117   :  { %v342_v47 = vadd.f32 %v1896_v32, %v341_v46  ;;  %v405_v50 = vmax.f32 %v339_v43, 0.0 }
 0x118   :  { %v408_v49 = vmax.f32 %v350_v45, 0.0 }
 0x119   :  { %v406_v51 = vmax.f32 %v342_v47, 0.0 }
 0x11a   :  { %v428_v52 = vpack.c.bf16 %v408_v49, %v407_v48 }
 0x11b   :  { %v427_v53 = vpack.c.bf16 %v406_v51, %v405_v50  ;;  %v1452_v54 = vpop.f32.mrb[24].mxu0 }
 0x11c   :  { %v363_v55 = vadd.f32 %v1452_v54, %v1896_v32  ;;  %v354_v56 = vpop.f32.mrb[25].mxu0 }
 0x11d   :  { %v355_v57 = vadd.f32 %v1896_v32, %v354_v56  ;;  %v1453_v58 = vpop.f32.mrb[26].mxu0  ;;  %1494 = vmatprep.mubr.bf16.mxu1 %v427_v53 }
 0x11e   :  { %v366_v59 = vadd.f32 %v1453_v58, %v1896_v32  ;;  %v357_v60 = vpop.f32.mrb[27].mxu0  ;;  %1495 = vmatmul.mubr.bf16.gmra.mrb[20].mxu1 %v428_v52  ;;  %v411_v62 = vmax.f32 %v363_v55, 0.0 }
 0x11f   :  { %v358_v61 = vadd.f32 %v1896_v32, %v357_v60  ;;  %v409_v0 = vmax.f32 %v355_v57, 0.0 }
 0x120   :  { %v412_v63 = vmax.f32 %v366_v59, 0.0 }
 0x121   :  { %v410_v1 = vmax.f32 %v358_v61, 0.0 }
 0x122   :  { %v430_v2 = vpack.c.bf16 %v412_v63, %v411_v62 }
 0x123   :  { %v429_v3 = vpack.c.bf16 %v410_v1, %v409_v0  ;;  %v1456_v4 = vpop.f32.mrb[28].mxu0 }
 0x124   :  { %v379_v5 = vadd.f32 %v1456_v4, %v1896_v32  ;;  %v370_v6 = vpop.f32.mrb[29].mxu0 }
 0x125   :  { %v371_v7 = vadd.f32 %v1896_v32, %v370_v6  ;;  %v1457_v8 = vpop.f32.mrb[30].mxu0  ;;  %1498 = vmatprep.mubr.bf16.mxu1 %v429_v3 }
 0x126   :  { %v382_v9 = vadd.f32 %v1457_v8, %v1896_v32  ;;  %v373_v10 = vpop.f32.mrb[31].mxu0  ;;  %1499 = vmatmul.mubr.bf16.gmra.mrb[24].mxu1 %v430_v2  ;;  %v415_v12 = vmax.f32 %v379_v5, 0.0 }
 0x127   :  { %v374_v11 = vadd.f32 %v1896_v32, %v373_v10  ;;  %v413_v14 = vmax.f32 %v371_v7, 0.0  ;;  %v1659_v32 = vld [vmem:[#allocation2 + $0x10] sm:$0xff]  }
 0x128   :  { %v416_v13 = vmax.f32 %v382_v9, 0.0  ;;  %1604 = vmatprep.subr.bf16.mxu1 %v1659_v32 }
 0x129   :  { %v414_v15 = vmax.f32 %v374_v11, 0.0  ;;  %1612 = vmatpush3.bf16.msra.mxu1 %v1659_v32 }
 0x12a   :  { %v432_v16 = vpack.c.bf16 %v416_v13, %v415_v12  ;;  %1605 = vmatprep.subr.bf16.mxu1 %v1933_v21 }
 0x12b   :  { %v431_v17 = vpack.c.bf16 %v414_v15, %v413_v14 }
 0x12d   :  { %1502 = vmatprep.mubr.bf16.mxu1 %v431_v17  ;;  %1613 = vmatpush3.bf16.msra.mxu1 %v1933_v21 }
 0x12e   :  { %1503 = vmatmul.mubr.bf16.gmra.mrb[28].mxu1 %v432_v16  ;;  %1606 = vmatprep.subr.bf16.mxu1 %v1936_v22 }
 0x131   :  { %1614 = vmatpush3.bf16.msra.mxu1 %v1936_v22 }
 0x132   :  { %1607 = vmatprep.subr.bf16.mxu1 %v1940_v23 }
 0x135   :  { %1615 = vmatpush3.bf16.msra.mxu1 %v1940_v23 }
 0x1c9   :  { %v1476_v25 = vpop.f32.mrb[0].mxu1 }
 0x1ca   :  { %v547_v26 = vadd.f32 %v1476_v25, %v1948_v24  ;;  %v538_v27 = vpop.f32.mrb[1].mxu1 }
 0x1cb   :  { %v539_v28 = vadd.f32 %v1948_v24, %v538_v27  ;;  %v1477_v29 = vpop.f32.mrb[2].mxu1 }
 0x1cc   :  { %v550_v30 = vadd.f32 %v1477_v29, %v1948_v24  ;;  %v541_v31 = vpop.f32.mrb[3].mxu1  ;;  %v667_v34 = vmax.f32 %v547_v26, 0.0 }
 0x1cd   :  { %v542_v33 = vadd.f32 %v1948_v24, %v541_v31  ;;  %v665_v36 = vmax.f32 %v539_v28, 0.0 }
 0x1ce   :  { %v668_v35 = vmax.f32 %v550_v30, 0.0 }
 0x1cf   :  { %v666_v37 = vmax.f32 %v542_v33, 0.0 }
 0x1d0   :  { %v698_v38 = vpack.c.bf16 %v668_v35, %v667_v34 }
 0x1d1   :  { %v697_v39 = vpack.c.bf16 %v666_v37, %v665_v36  ;;  %v1480_v40 = vpop.f32.mrb[4].mxu1 }
 0x1d2   :  { %v563_v41 = vadd.f32 %v1480_v40, %v1948_v24  ;;  %v554_v42 = vpop.f32.mrb[5].mxu1 }
 0x1d3   :  { %v555_v43 = vadd.f32 %v1948_v24, %v554_v42  ;;  %v1481_v44 = vpop.f32.mrb[6].mxu1  ;;  %1522 = vmatprep.mubr.bf16.mxu0 %v697_v39 }
 0x1d4   :  { %v566_v45 = vadd.f32 %v1481_v44, %v1948_v24  ;;  %v557_v46 = vpop.f32.mrb[7].mxu1  ;;  %1523 = vmatmul.mubr.bf16.vlgmr.msra.gmra.mrb[32].mxu0 %v698_v38  ;;  %v671_v48 = vmax.f32 %v563_v41, 0.0 }
 0x1d5   :  { %v558_v47 = vadd.f32 %v1948_v24, %v557_v46  ;;  %1555 = vmatpush3.bf16.msra.mxu0 %v1657_v19  ;;  %v669_v50 = vmax.f32 %v555_v43, 0.0 }
 0x1d6   :  { %v672_v49 = vmax.f32 %v566_v45, 0.0  ;;  %1556 = vmatprep.subr.bf16.mxu0 %v1658_v20 }
 0x1d7   :  { %v670_v51 = vmax.f32 %v558_v47, 0.0 }
 0x1d8   :  { %v700_v52 = vpack.c.bf16 %v672_v49, %v671_v48 }
 0x1d9   :  { %v699_v53 = vpack.c.bf16 %v670_v51, %v669_v50  ;;  %v1484_v54 = vpop.f32.mrb[8].mxu1  ;;  %1557 = vmatpush3.bf16.msra.mxu0 %v1658_v20 }
 0x1da   :  { %v579_v55 = vadd.f32 %v1484_v54, %v1948_v24  ;;  %v570_v56 = vpop.f32.mrb[9].mxu1  ;;  %1558 = vmatprep.subr.bf16.mxu0 %v1659_v32 }
 0x1db   :  { %v571_v57 = vadd.f32 %v1948_v24, %v570_v56  ;;  %v1485_v58 = vpop.f32.mrb[10].mxu1  ;;  %1526 = vmatprep.mubr.bf16.mxu0 %v699_v53 }
 0x1dc   :  { %v582_v59 = vadd.f32 %v1485_v58, %v1948_v24  ;;  %v573_v60 = vpop.f32.mrb[11].mxu1  ;;  %1527 = vmatmul.mubr.bf16.gmra.mrb[36].mxu0 %v700_v52  ;;  %v675_v62 = vmax.f32 %v579_v55, 0.0 }
 0x1dd   :  { %v574_v61 = vadd.f32 %v1948_v24, %v573_v60  ;;  %1559 = vmatpush3.bf16.msra.mxu0 %v1659_v32  ;;  %v673_v0 = vmax.f32 %v571_v57, 0.0 }
 0x1de   :  { %v676_v63 = vmax.f32 %v582_v59, 0.0  ;;  %1560 = vmatprep.subr.bf16.mxu0 %v1933_v21 }
 0x1df   :  { %v674_v1 = vmax.f32 %v574_v61, 0.0 }
 0x1e0   :  { %v702_v2 = vpack.c.bf16 %v676_v63, %v675_v62 }
 0x1e1   :  { %v701_v3 = vpack.c.bf16 %v674_v1, %v673_v0  ;;  %v1488_v4 = vpop.f32.mrb[12].mxu1  ;;  %1561 = vmatpush3.bf16.msra.mxu0 %v1933_v21 }
 0x1e2   :  { %v595_v5 = vadd.f32 %v1488_v4, %v1948_v24  ;;  %v586_v6 = vpop.f32.mrb[13].mxu1  ;;  %1562 = vmatprep.subr.bf16.mxu0 %v1936_v22 }
 0x1e3   :  { %v587_v7 = vadd.f32 %v1948_v24, %v586_v6  ;;  %v1489_v8 = vpop.f32.mrb[14].mxu1  ;;  %1530 = vmatprep.mubr.bf16.mxu0 %v701_v3 }
 0x1e4   :  { %v598_v9 = vadd.f32 %v1489_v8, %v1948_v24  ;;  %v589_v10 = vpop.f32.mrb[15].mxu1  ;;  %1531 = vmatmul.mubr.bf16.gmra.mrb[40].mxu0 %v702_v2  ;;  %v679_v12 = vmax.f32 %v595_v5, 0.0 }
 0x1e5   :  { %v590_v11 = vadd.f32 %v1948_v24, %v589_v10  ;;  %1563 = vmatpush3.bf16.msra.mxu0 %v1936_v22  ;;  %v677_v14 = vmax.f32 %v587_v7, 0.0 }
 0x1e6   :  { %v680_v13 = vmax.f32 %v598_v9, 0.0  ;;  %1564 = vmatprep.subr.bf16.mxu0 %v1940_v23 }
 0x1e7   :  { %v678_v15 = vmax.f32 %v590_v11, 0.0  ;;  %v1663_v11 = vld [vmem:[#allocation2 + $0x30] sm:$0xff]  }
 0x1e8   :  { %v704_v16 = vpack.c.bf16 %v680_v13, %v679_v12  ;;  %1608 = vmatprep.subr.bf16.mxu1 %v1663_v11  ;;  %v1664_v12 = vld [vmem:[#allocation2 + $0x38] sm:$0xff]  }
 0x1e9   :  { %v703_v17 = vpack.c.bf16 %v678_v15, %v677_v14  ;;  %v1492_v18 = vpop.f32.mrb[16].mxu1  ;;  %1565 = vmatpush3.bf16.msra.mxu0 %v1940_v23  ;;  %1616 = vmatpush3.bf16.msra.mxu1 %v1663_v11 }
 0x1ea   :  { %v611_v19 = vadd.f32 %v1492_v18, %v1948_v24  ;;  %v602_v20 = vpop.f32.mrb[17].mxu1  ;;  %1566 = vmatprep.subr.bf16.mxu0 %v1663_v11  ;;  %1609 = vmatprep.subr.bf16.mxu1 %v1664_v12 }
 0x1eb   :  { %v603_v32 = vadd.f32 %v1948_v24, %v602_v20  ;;  %v1493_v21 = vpop.f32.mrb[18].mxu1  ;;  %1534 = vmatprep.mubr.bf16.mxu0 %v703_v17 }
 0x1ec   :  { %v614_v22 = vadd.f32 %v1493_v21, %v1948_v24  ;;  %v605_v25 = vpop.f32.mrb[19].mxu1  ;;  %1535 = vmatmul.mubr.bf16.gmra.mrb[44].mxu0 %v704_v16  ;;  %v683_v27 = vmax.f32 %v611_v19, 0.0 }
 0x1ed   :  { %v606_v26 = vadd.f32 %v1948_v24, %v605_v25  ;;  %v681_v29 = vmax.f32 %v603_v32, 0.0  ;;  %1567 = vmatpush3.bf16.msra.mxu0 %v1663_v11  ;;  %1617 = vmatpush3.bf16.msra.mxu1 %v1664_v12 }
 0x1ee   :  { %v684_v28 = vmax.f32 %v614_v22, 0.0  ;;  %1568 = vmatprep.subr.bf16.mxu0 %v1664_v12 }
 0x1ef   :  { %v682_v30 = vmax.f32 %v606_v26, 0.0 }
 0x1f0   :  { %v706_v31 = vpack.c.bf16 %v684_v28, %v683_v27 }
 0x1f1   :  { %v705_v33 = vpack.c.bf16 %v682_v30, %v681_v29  ;;  %v1496_v23 = vpop.f32.mrb[20].mxu1  ;;  %1569 = vmatpush3.bf16.msra.mxu0 %v1664_v12 }
 0x1f2   :  { %v627_v34 = vadd.f32 %v1496_v23, %v1948_v24  ;;  %v618_v35 = vpop.f32.mrb[21].mxu1 }
 0x1f3   :  { %v619_v36 = vadd.f32 %v1948_v24, %v618_v35  ;;  %v1497_v37 = vpop.f32.mrb[22].mxu1  ;;  %1538 = vmatprep.mubr.bf16.mxu0 %v705_v33 }
 0x1f4   :  { %v630_v38 = vadd.f32 %v1497_v37, %v1948_v24  ;;  %v621_v39 = vpop.f32.mrb[23].mxu1  ;;  %1539 = vmatmul.mubr.bf16.gmra.mrb[48].mxu0 %v706_v31  ;;  %v687_v41 = vmax.f32 %v627_v34, 0.0 }
 0x1f5   :  { %v622_v40 = vadd.f32 %v1948_v24, %v621_v39  ;;  %v685_v43 = vmax.f32 %v619_v36, 0.0 }
 0x1f6   :  { %v688_v42 = vmax.f32 %v630_v38, 0.0 }
 0x1f7   :  { %v686_v44 = vmax.f32 %v622_v40, 0.0 }
 0x1f8   :  { %v708_v45 = vpack.c.bf16 %v688_v42, %v687_v41 }
 0x1f9   :  { %v707_v46 = vpack.c.bf16 %v686_v44, %v685_v43  ;;  %v1500_v47 = vpop.f32.mrb[24].mxu1 }
 0x1fa   :  { %v643_v48 = vadd.f32 %v1500_v47, %v1948_v24  ;;  %v634_v49 = vpop.f32.mrb[25].mxu1 }
 0x1fb   :  { %v635_v50 = vadd.f32 %v1948_v24, %v634_v49  ;;  %v1501_v51 = vpop.f32.mrb[26].mxu1  ;;  %1542 = vmatprep.mubr.bf16.mxu0 %v707_v46 }
 0x1fc   :  { %v646_v52 = vadd.f32 %v1501_v51, %v1948_v24  ;;  %v637_v53 = vpop.f32.mrb[27].mxu1  ;;  %1543 = vmatmul.mubr.bf16.gmra.mrb[52].mxu0 %v708_v45  ;;  %v691_v55 = vmax.f32 %v643_v48, 0.0 }
 0x1fd   :  { %v638_v54 = vadd.f32 %v1948_v24, %v637_v53  ;;  %v689_v57 = vmax.f32 %v635_v50, 0.0 }
 0x1fe   :  { %v692_v56 = vmax.f32 %v646_v52, 0.0 }
 0x1ff   :  { %v690_v58 = vmax.f32 %v638_v54, 0.0 }
 0x200   :  { %v710_v59 = vpack.c.bf16 %v692_v56, %v691_v55 }
 0x201   :  { %v709_v60 = vpack.c.bf16 %v690_v58, %v689_v57  ;;  %v1504_v61 = vpop.f32.mrb[28].mxu1 }
 0x202   :  { %v659_v62 = vadd.f32 %v1504_v61, %v1948_v24  ;;  %v650_v63 = vpop.f32.mrb[29].mxu1 }
 0x203   :  { %v651_v0 = vadd.f32 %v1948_v24, %v650_v63  ;;  %v1505_v1 = vpop.f32.mrb[30].mxu1  ;;  %1546 = vmatprep.mubr.bf16.mxu0 %v709_v60 }
 0x204   :  { %v662_v2 = vadd.f32 %v1505_v1, %v1948_v24  ;;  %v653_v3 = vpop.f32.mrb[31].mxu1  ;;  %1547 = vmatmul.mubr.bf16.gmra.mrb[56].mxu0 %v710_v59  ;;  %v695_v5 = vmax.f32 %v659_v62, 0.0 }
 0x205   :  { %v654_v4 = vadd.f32 %v1948_v24, %v653_v3  ;;  %v693_v7 = vmax.f32 %v651_v0, 0.0  ;;  %v1991_v24 = vld [vmem:[%s2080_s6] ss:$0 sm:$0xff] }
 0x206   :  { %v696_v6 = vmax.f32 %v662_v2, 0.0 }
 0x207   :  { %v694_v8 = vmax.f32 %v654_v4, 0.0 }
 0x208   :  { %v712_v9 = vpack.c.bf16 %v696_v6, %v695_v5 }
 0x209   :  { %v711_v10 = vpack.c.bf16 %v694_v8, %v693_v7 }
 0x20b   :  { %1550 = vmatprep.mubr.bf16.mxu0 %v711_v10 }
 0x20c   :  { %1551 = vmatmul.mubr.bf16.gmra.mrb[60].mxu0 %v712_v9 }
 0x2a7   :  { %v1524_v13 = vpop.f32.mrb[32].mxu0 }
 0x2a8   :  { %v827_v14 = vadd.f32 %v1524_v13, %v1991_v24  ;;  %v818_v15 = vpop.f32.mrb[33].mxu0 }
 0x2a9   :  { %v819_v16 = vadd.f32 %v1991_v24, %v818_v15  ;;  %v1525_v17 = vpop.f32.mrb[34].mxu0 }
 0x2aa   :  { %v830_v18 = vadd.f32 %v1525_v17, %v1991_v24  ;;  %v821_v19 = vpop.f32.mrb[35].mxu0  ;;  %v947_v32 = vmax.f32 %v827_v14, 0.0 }
 0x2ab   :  { %v822_v20 = vadd.f32 %v1991_v24, %v821_v19  ;;  %v945_v22 = vmax.f32 %v819_v16, 0.0 }
 0x2ac   :  { %v948_v21 = vmax.f32 %v830_v18, 0.0 }
 0x2ad   :  { %v946_v25 = vmax.f32 %v822_v20, 0.0 }
 0x2ae   :  { %v978_v26 = vpack.c.bf16 %v948_v21, %v947_v32 }
 0x2af   :  { %v977_v27 = vpack.c.bf16 %v946_v25, %v945_v22  ;;  %v1528_v28 = vpop.f32.mrb[36].mxu0 }
 0x2b0   :  { %v843_v29 = vadd.f32 %v1528_v28, %v1991_v24  ;;  %v834_v30 = vpop.f32.mrb[37].mxu0 }
 0x2b1   :  { %v835_v31 = vadd.f32 %v1991_v24, %v834_v30  ;;  %v1529_v33 = vpop.f32.mrb[38].mxu0  ;;  %1570 = vmatprep.mubr.bf16.mxu0 %v977_v27 }
 0x2b2   :  { %v846_v23 = vadd.f32 %v1529_v33, %v1991_v24  ;;  %v837_v34 = vpop.f32.mrb[39].mxu0  ;;  %1571 = vmatmul.mubr.bf16.vlgmr.msra.gmra.mrb[64].mxu0 %v978_v26  ;;  %v951_v36 = vmax.f32 %v843_v29, 0.0 }
 0x2b3   :  { %v838_v35 = vadd.f32 %v1991_v24, %v837_v34  ;;  %v949_v38 = vmax.f32 %v835_v31, 0.0 }
 0x2b4   :  { %v952_v37 = vmax.f32 %v846_v23, 0.0 }
 0x2b5   :  { %v950_v39 = vmax.f32 %v838_v35, 0.0 }
 0x2b6   :  { %v980_v40 = vpack.c.bf16 %v952_v37, %v951_v36 }
 0x2b7   :  { %v979_v41 = vpack.c.bf16 %v950_v39, %v949_v38  ;;  %v1532_v42 = vpop.f32.mrb[40].mxu0 }
 0x2b8   :  { %v859_v43 = vadd.f32 %v1532_v42, %v1991_v24  ;;  %v850_v44 = vpop.f32.mrb[41].mxu0 }
 0x2b9   :  { %v851_v45 = vadd.f32 %v1991_v24, %v850_v44  ;;  %v1533_v46 = vpop.f32.mrb[42].mxu0  ;;  %1574 = vmatprep.mubr.bf16.mxu1 %v979_v41 }
 0x2ba   :  { %v862_v47 = vadd.f32 %v1533_v46, %v1991_v24  ;;  %v853_v48 = vpop.f32.mrb[43].mxu0  ;;  %1575 = vmatmul.mubr.bf16.vlgmr.msra.gmra.mrb[32].mxu1 %v980_v40  ;;  %v955_v50 = vmax.f32 %v859_v43, 0.0 }
 0x2bb   :  { %v854_v49 = vadd.f32 %v1991_v24, %v853_v48  ;;  %v953_v52 = vmax.f32 %v851_v45, 0.0 }
 0x2bc   :  { %v956_v51 = vmax.f32 %v862_v47, 0.0 }
 0x2bd   :  { %v954_v53 = vmax.f32 %v854_v49, 0.0 }
 0x2be   :  { %v982_v54 = vpack.c.bf16 %v956_v51, %v955_v50 }
 0x2bf   :  { %v981_v55 = vpack.c.bf16 %v954_v53, %v953_v52  ;;  %v1536_v56 = vpop.f32.mrb[44].mxu0 }
 0x2c0   :  { %v875_v57 = vadd.f32 %v1536_v56, %v1991_v24  ;;  %v866_v58 = vpop.f32.mrb[45].mxu0 }
 0x2c1   :  { %v867_v59 = vadd.f32 %v1991_v24, %v866_v58  ;;  %v1537_v60 = vpop.f32.mrb[46].mxu0  ;;  %1578 = vmatprep.mubr.bf16.mxu1 %v981_v55 }
 0x2c2   :  { %v878_v61 = vadd.f32 %v1537_v60, %v1991_v24  ;;  %v869_v62 = vpop.f32.mrb[47].mxu0  ;;  %1579 = vmatmul.mubr.bf16.gmra.mrb[36].mxu1 %v982_v54  ;;  %v959_v0 = vmax.f32 %v875_v57, 0.0 }
 0x2c3   :  { %v870_v63 = vadd.f32 %v1991_v24, %v869_v62  ;;  %v957_v2 = vmax.f32 %v867_v59, 0.0 }
 0x2c4   :  { %v960_v1 = vmax.f32 %v878_v61, 0.0 }
 0x2c5   :  { %v958_v3 = vmax.f32 %v870_v63, 0.0  ;;  %v2028_v63 = vld [vmem:[%s2082_s8] ss:$0 sm:$0xff]  ;;  %s1716_s8 = smov [#allocation5]  }
 0x2c6   :  { %v984_v4 = vpack.c.bf16 %v960_v1, %v959_v0  ;;  %s1262_s22 = sshll.u32 %s1716_s8, 4  ;;  %s1263_s22 = int_to_ptr.vmem [resolvable:$true] %s1262_s22 }
 0x2c7   :  { %v983_v5 = vpack.c.bf16 %v958_v3, %v957_v2  ;;  %v1540_v6 = vpop.f32.mrb[48].mxu0  ;;  %s1687_s23 = scalar_lea.vmem %s1263_s22, 4096  ;;  %p1692_p9 = scmp.lt.s32.totalorder %s1263_s22, %s1263_s22 }
 0x2c8   :  { %v891_v7 = vadd.f32 %v1540_v6, %v1991_v24  ;;  %v882_v8 = vpop.f32.mrb[49].mxu0  ;;  %p1688_p8 = scmp.ne.s32.totalorder %s1263_s22, %s1687_s23  ;;  %p1693_p10 = scmp.lt.s32.totalorder %s1687_s23, %s1687_s23 }
 0x2c9   :  { %v883_v9 = vadd.f32 %v1991_v24, %v882_v8  ;;  %v1541_v10 = vpop.f32.mrb[50].mxu0  ;;  %1582 = vmatprep.mubr.bf16.mxu1 %v983_v5 }
 0x2ca   :  { %v894_v11 = vadd.f32 %v1541_v10, %v1991_v24  ;;  %v885_v12 = vpop.f32.mrb[51].mxu0  ;;  %1583 = vmatmul.mubr.bf16.gmra.mrb[40].mxu1 %v984_v4  ;;  %v963_v14 = vmax.f32 %v891_v7, 0.0  ;;  %p1694_p11 = por %p1693_p10, %p1692_p9 }
 0x2cb   :  { %v886_v13 = vadd.f32 %v1991_v24, %v885_v12  ;;  %v961_v16 = vmax.f32 %v883_v9, 0.0 }
 0x2cc   :  { %v964_v15 = vmax.f32 %v894_v11, 0.0  ;;  %p1695_p12 = pnand %p1694_p11, %p1688_p8 }
 0x2cd   :  { %v962_v17 = vmax.f32 %v886_v13, 0.0 }
 0x2ce   :  { %v986_v18 = vpack.c.bf16 %v964_v15, %v963_v14 }
 0x2cf   :  { %v985_v19 = vpack.c.bf16 %v962_v17, %v961_v16  ;;  %v1544_v20 = vpop.f32.mrb[52].mxu0 }
 0x2d0   :  { %v907_v32 = vadd.f32 %v1544_v20, %v1991_v24  ;;  %v898_v21 = vpop.f32.mrb[53].mxu0 }
 0x2d1   :  { %v899_v22 = vadd.f32 %v1991_v24, %v898_v21  ;;  %v1545_v25 = vpop.f32.mrb[54].mxu0  ;;  %1586 = vmatprep.mubr.bf16.mxu1 %v985_v19 }
 0x2d2   :  { %v910_v26 = vadd.f32 %v1545_v25, %v1991_v24  ;;  %v901_v27 = vpop.f32.mrb[55].mxu0  ;;  %1587 = vmatmul.mubr.bf16.gmra.mrb[44].mxu1 %v986_v18  ;;  %v967_v29 = vmax.f32 %v907_v32, 0.0 }
 0x2d3   :  { %v902_v28 = vadd.f32 %v1991_v24, %v901_v27  ;;  %v965_v31 = vmax.f32 %v899_v22, 0.0 }
 0x2d4   :  { %v968_v30 = vmax.f32 %v910_v26, 0.0 }
 0x2d5   :  { %v966_v33 = vmax.f32 %v902_v28, 0.0 }
 0x2d6   :  { %v988_v23 = vpack.c.bf16 %v968_v30, %v967_v29 }
 0x2d7   :  { %v987_v34 = vpack.c.bf16 %v966_v33, %v965_v31  ;;  %v1548_v35 = vpop.f32.mrb[56].mxu0 }
 0x2d8   :  { %v923_v36 = vadd.f32 %v1548_v35, %v1991_v24  ;;  %v914_v37 = vpop.f32.mrb[57].mxu0 }
 0x2d9   :  { %v915_v38 = vadd.f32 %v1991_v24, %v914_v37  ;;  %v1549_v39 = vpop.f32.mrb[58].mxu0  ;;  %1590 = vmatprep.mubr.bf16.mxu1 %v987_v34 }
 0x2da   :  { %v926_v40 = vadd.f32 %v1549_v39, %v1991_v24  ;;  %v917_v41 = vpop.f32.mrb[59].mxu0  ;;  %1591 = vmatmul.mubr.bf16.gmra.mrb[48].mxu1 %v988_v23  ;;  %v971_v43 = vmax.f32 %v923_v36, 0.0 }
 0x2db   :  { %v918_v42 = vadd.f32 %v1991_v24, %v917_v41  ;;  %v969_v45 = vmax.f32 %v915_v38, 0.0 }
 0x2dc   :  { %v972_v44 = vmax.f32 %v926_v40, 0.0 }
 0x2dd   :  { %v970_v46 = vmax.f32 %v918_v42, 0.0 }
 0x2de   :  { %v990_v47 = vpack.c.bf16 %v972_v44, %v971_v43 }
 0x2df   :  { %v989_v48 = vpack.c.bf16 %v970_v46, %v969_v45  ;;  %v1552_v49 = vpop.f32.mrb[60].mxu0 }
 0x2e0   :  { %v939_v50 = vadd.f32 %v1552_v49, %v1991_v24  ;;  %v930_v51 = vpop.f32.mrb[61].mxu0 }
 0x2e1   :  { %v931_v52 = vadd.f32 %v1991_v24, %v930_v51  ;;  %v1553_v53 = vpop.f32.mrb[62].mxu0  ;;  %1594 = vmatprep.mubr.bf16.mxu1 %v989_v48 }
 0x2e2   :  { %v942_v54 = vadd.f32 %v1553_v53, %v1991_v24  ;;  %v933_v55 = vpop.f32.mrb[63].mxu0  ;;  %1595 = vmatmul.mubr.bf16.gmra.mrb[52].mxu1 %v990_v47  ;;  %v975_v57 = vmax.f32 %v939_v50, 0.0 }
 0x2e3   :  { %v934_v56 = vadd.f32 %v1991_v24, %v933_v55  ;;  %v973_v59 = vmax.f32 %v931_v52, 0.0 }
 0x2e4   :  { %v976_v58 = vmax.f32 %v942_v54, 0.0 }
 0x2e5   :  { %v974_v60 = vmax.f32 %v934_v56, 0.0 }
 0x2e6   :  { %v992_v61 = vpack.c.bf16 %v976_v58, %v975_v57 }
 0x2e7   :  { %v991_v62 = vpack.c.bf16 %v974_v60, %v973_v59 }
 0x2e9   :  { %1598 = vmatprep.mubr.bf16.mxu1 %v991_v62 }
 0x2ea   :  { %1599 = vmatmul.mubr.bf16.gmra.mrb[56].mxu1 %v992_v61 }
 0x385   :  { %v1572_v0 = vpop.f32.mrb[64].mxu0 }
 0x386   :  { %v1107_v1 = vadd.f32 %v1572_v0, %v2028_v63  ;;  %v1098_v2 = vpop.f32.mrb[65].mxu0 }
 0x387   :  { %v1099_v3 = vadd.f32 %v2028_v63, %v1098_v2  ;;  %v1573_v24 = vpop.f32.mrb[66].mxu0 }
 0x388   :  { %1227 = vst [vmem:[#allocation5 + $0x10] sm:$0xff] %v1107_v1  ;;  %v1110_v4 = vadd.f32 %v1573_v24, %v2028_v63  ;;  %v1101_v5 = vpop.f32.mrb[67].mxu0 }
 0x389   :  { %1225 = vst [vmem:[#allocation5] sm:$0xff] %v1099_v3  ;;  %v1102_v6 = vadd.f32 %v2028_v63, %v1101_v5 }
 0x38a   :  { %1228 = vst [vmem:[#allocation5 + $0x18] sm:$0xff] %v1110_v4 }
 0x38b   :  { %1226 = vst [vmem:[#allocation5 + $0x8] sm:$0xff] %v1102_v6 }
 0x38d   :  { %v1576_v7 = vpop.f32.mrb[32].mxu1 }
 0x38e   :  { %v1123_v8 = vadd.f32 %v1576_v7, %v2028_v63  ;;  %v1114_v9 = vpop.f32.mrb[33].mxu1 }
 0x38f   :  { %v1115_v10 = vadd.f32 %v2028_v63, %v1114_v9  ;;  %v1577_v11 = vpop.f32.mrb[34].mxu1 }
 0x390   :  { %1231 = vst [vmem:[#allocation5 + $0x30] sm:$0xff] %v1123_v8  ;;  %v1126_v12 = vadd.f32 %v1577_v11, %v2028_v63  ;;  %v1117_v13 = vpop.f32.mrb[35].mxu1 }
 0x391   :  { %1229 = vst [vmem:[#allocation5 + $0x20] sm:$0xff] %v1115_v10  ;;  %v1118_v14 = vadd.f32 %v2028_v63, %v1117_v13 }
 0x392   :  { %1232 = vst [vmem:[#allocation5 + $0x38] sm:$0xff] %v1126_v12 }
 0x393   :  { %1230 = vst [vmem:[#allocation5 + $0x28] sm:$0xff] %v1118_v14 }
 0x395   :  { %v1580_v15 = vpop.f32.mrb[36].mxu1 }
 0x396   :  { %v1139_v16 = vadd.f32 %v1580_v15, %v2028_v63  ;;  %v1130_v17 = vpop.f32.mrb[37].mxu1 }
 0x397   :  { %v1131_v18 = vadd.f32 %v2028_v63, %v1130_v17  ;;  %v1581_v19 = vpop.f32.mrb[38].mxu1 }
 0x398   :  { %1235 = vst [vmem:[#allocation5 + $0x50] sm:$0xff] %v1139_v16  ;;  %v1142_v20 = vadd.f32 %v1581_v19, %v2028_v63  ;;  %v1133_v32 = vpop.f32.mrb[39].mxu1 }
 0x399   :  { %1233 = vst [vmem:[#allocation5 + $0x40] sm:$0xff] %v1131_v18  ;;  %v1134_v21 = vadd.f32 %v2028_v63, %v1133_v32 }
 0x39a   :  { %1236 = vst [vmem:[#allocation5 + $0x58] sm:$0xff] %v1142_v20 }
 0x39b   :  { %1234 = vst [vmem:[#allocation5 + $0x48] sm:$0xff] %v1134_v21 }
 0x39d   :  { %v1584_v22 = vpop.f32.mrb[40].mxu1 }
 0x39e   :  { %v1155_v25 = vadd.f32 %v1584_v22, %v2028_v63  ;;  %v1146_v26 = vpop.f32.mrb[41].mxu1 }
 0x39f   :  { %v1147_v27 = vadd.f32 %v2028_v63, %v1146_v26  ;;  %v1585_v28 = vpop.f32.mrb[42].mxu1 }
 0x3a0   :  { %1239 = vst [vmem:[#allocation5 + $0x70] sm:$0xff] %v1155_v25  ;;  %v1158_v29 = vadd.f32 %v1585_v28, %v2028_v63  ;;  %v1149_v30 = vpop.f32.mrb[43].mxu1 }
 0x3a1   :  { %1237 = vst [vmem:[#allocation5 + $0x60] sm:$0xff] %v1147_v27  ;;  %v1150_v31 = vadd.f32 %v2028_v63, %v1149_v30 }
 0x3a2   :  { %1240 = vst [vmem:[#allocation5 + $0x78] sm:$0xff] %v1158_v29 }
 0x3a3   :  { %1238 = vst [vmem:[#allocation5 + $0x68] sm:$0xff] %v1150_v31 }
 0x3a5   :  { %v1588_v33 = vpop.f32.mrb[44].mxu1 }
 0x3a6   :  { %v1171_v23 = vadd.f32 %v1588_v33, %v2028_v63  ;;  %v1162_v34 = vpop.f32.mrb[45].mxu1 }
 0x3a7   :  { %v1163_v35 = vadd.f32 %v2028_v63, %v1162_v34  ;;  %v1589_v36 = vpop.f32.mrb[46].mxu1 }
 0x3a8   :  { %1243 = vst [vmem:[#allocation5 + $0x90] sm:$0xff] %v1171_v23  ;;  %v1174_v37 = vadd.f32 %v1589_v36, %v2028_v63  ;;  %v1165_v38 = vpop.f32.mrb[47].mxu1 }
 0x3a9   :  { %1241 = vst [vmem:[#allocation5 + $0x80] sm:$0xff] %v1163_v35  ;;  %v1166_v39 = vadd.f32 %v2028_v63, %v1165_v38 }
 0x3aa   :  { %1244 = vst [vmem:[#allocation5 + $0x98] sm:$0xff] %v1174_v37 }
 0x3ab   :  { %1242 = vst [vmem:[#allocation5 + $0x88] sm:$0xff] %v1166_v39 }
 0x3ad   :  { %v1592_v40 = vpop.f32.mrb[48].mxu1 }
 0x3ae   :  { %v1187_v41 = vadd.f32 %v1592_v40, %v2028_v63  ;;  %v1178_v42 = vpop.f32.mrb[49].mxu1 }
 0x3af   :  { %v1179_v43 = vadd.f32 %v2028_v63, %v1178_v42  ;;  %v1593_v44 = vpop.f32.mrb[50].mxu1 }
 0x3b0   :  { %1247 = vst [vmem:[#allocation5 + $0xb0] sm:$0xff] %v1187_v41  ;;  %v1190_v45 = vadd.f32 %v1593_v44, %v2028_v63  ;;  %v1181_v46 = vpop.f32.mrb[51].mxu1 }
 0x3b1   :  { %1245 = vst [vmem:[#allocation5 + $0xa0] sm:$0xff] %v1179_v43  ;;  %v1182_v47 = vadd.f32 %v2028_v63, %v1181_v46 }
 0x3b2   :  { %1248 = vst [vmem:[#allocation5 + $0xb8] sm:$0xff] %v1190_v45 }
 0x3b3   :  { %1246 = vst [vmem:[#allocation5 + $0xa8] sm:$0xff] %v1182_v47 }
 0x3b5   :  { %v1596_v48 = vpop.f32.mrb[52].mxu1 }
 0x3b6   :  { %v1203_v49 = vadd.f32 %v1596_v48, %v2028_v63  ;;  %v1194_v50 = vpop.f32.mrb[53].mxu1 }
 0x3b7   :  { %v1195_v51 = vadd.f32 %v2028_v63, %v1194_v50  ;;  %v1597_v52 = vpop.f32.mrb[54].mxu1 }
 0x3b8   :  { %1251 = vst [vmem:[#allocation5 + $0xd0] sm:$0xff] %v1203_v49  ;;  %v1206_v53 = vadd.f32 %v1597_v52, %v2028_v63  ;;  %v1197_v54 = vpop.f32.mrb[55].mxu1 }
 0x3b9   :  { %1249 = vst [vmem:[#allocation5 + $0xc0] sm:$0xff] %v1195_v51  ;;  %v1198_v55 = vadd.f32 %v2028_v63, %v1197_v54 }
 0x3ba   :  { %1252 = vst [vmem:[#allocation5 + $0xd8] sm:$0xff] %v1206_v53 }
 0x3bb   :  { %1250 = vst [vmem:[#allocation5 + $0xc8] sm:$0xff] %v1198_v55 }
 0x3bd   :  { %v1600_v56 = vpop.f32.mrb[56].mxu1 }
 0x3be   :  { %v1219_v57 = vadd.f32 %v1600_v56, %v2028_v63  ;;  %v1210_v58 = vpop.f32.mrb[57].mxu1 }
 0x3bf   :  { %v1211_v59 = vadd.f32 %v2028_v63, %v1210_v58  ;;  %v1601_v60 = vpop.f32.mrb[58].mxu1 }
 0x3c0   :  { %1255 = vst [vmem:[#allocation5 + $0xf0] sm:$0xff] %v1219_v57  ;;  %v1222_v61 = vadd.f32 %v1601_v60, %v2028_v63  ;;  %v1213_v62 = vpop.f32.mrb[59].mxu1 }
 0x3c1   :  { %1253 = vst [vmem:[#allocation5 + $0xe0] sm:$0xff] %v1211_v59  ;;  %v1214_v0 = vadd.f32 %v2028_v63, %v1213_v62 }
 0x3c2   :  { %1256 = vst [vmem:[#allocation5 + $0xf8] sm:$0xff] %v1222_v61 }
 0x3c3   :  { %1254 = vst [vmem:[#allocation5 + $0xe8] sm:$0xff] %v1214_v0 }
 0x3c4   :  { %1698 = shalt.err (!%p1695_p12)
}
 0x3c5   :  { %s1699_s26 = scalar_lea.hbm %s2083_s9, 4096 }
 0x3c6   :  { %p1700_p13 = scmp.ne.s32.totalorder %s2083_s9, %s1699_s26  ;;  %p1703_p0 = scmp.lt.u32.totalorder %s1699_s26, %s2083_s9 }
 0x3c8   :  { %p1705_p1 = pnand %p1703_p0, %p1700_p13 }
 0x3ca   :  { %1708 = shalt.err (!%p1705_p1)
}
 0x3cb   :  { %s1717_s29 = smov 128   ;;  %s1718_s1 = smov 8  }
 0x3cc   :  { %1268 = dma.vmem_to_hbm [thread:$0]  %s1263_s22, 4096, %s2083_s9, [#allocation4], %s1717_s29, %s1717_s29, %s1718_s1  }
 0x3cd   :  { %1711 = dma.done.wait [#allocation4], 4096  }
 0x3ce   :  { %1712 = vsyncadd [#allocation4], 4294963200 }
 0x3cf   :  { %1272 = vsyncpa [#allocation3], 1 }
 0x3d0   :  { %1273 = vsyncpa [#allocation4], 1 }

</bundles_post_ra>
